<compile_context>
chip_gen: v7x
topology: tpu7x:2x2x1
jax: 0.10.0
libtpu: 0.0.40
codegen_flags: <defaults>
</compile_context>

<pallas_src>
import jax
import jax.numpy as jnp
from jax.experimental import pallas as pl
from jax.experimental.pallas import tpu as pltpu


def _round_up(x, m):
    return ((x + m - 1) // m) * m


def _vmem_capacity_bytes():
    """Physical VMEM of the local chip; falls back to the smallest (v7x)."""
    try:
        return int(pltpu.get_tpu_info().vmem_capacity_bytes)
    except Exception:
        return 64 << 20   # v7x-safe fallback (v5e/v6e have 128 MiB)


def _vmem_array_bytes(shape, itemsize):
    """Approximate per-buffer VMEM footprint: minor dims padded to (8, 128)."""
    s = list(shape)
    if len(s) == 1:
        s = [1] + s
    s[-1] = _round_up(s[-1], 128)
    s[-2] = _round_up(s[-2], 8)
    n = 1
    for d in s:
        n *= d
    return n * itemsize


# --------------------------------------------------------------------------
# Kernels
# --------------------------------------------------------------------------
def _make_resident_kernel(n_h):
    """MLP forward with ALL weights resident in VMEM; grid = (batch_tiles,)."""

    def _input_layer(x_ref, w_in_ref, b_in_ref, h_ref):
        xv = x_ref[...].astype(w_in_ref.dtype)
        pre = jnp.dot(xv, w_in_ref[...], preferred_element_type=jnp.float32)
        h_ref[...] = jnp.tanh(pre + b_in_ref[...]).astype(h_ref.dtype)

    def _output_layer(h_ref, w_out_ref, b_out_ref, o_ref):
        out = jnp.dot(h_ref[...], w_out_ref[...],
                      preferred_element_type=jnp.float32)
        o_ref[...] = (out + b_out_ref[...]).astype(o_ref.dtype)

    if n_h > 0:
        def kernel(x_ref, w_in_ref, b_in_ref, w_h_ref, b_h_ref,
                   w_out_ref, b_out_ref, o_ref, h_ref):
            _input_layer(x_ref, w_in_ref, b_in_ref, h_ref)

            def hidden(i, carry):
                pre = jnp.dot(h_ref[...], w_h_ref[i],
                              preferred_element_type=jnp.float32)
                h_ref[...] = jnp.tanh(pre + b_h_ref[i]).astype(h_ref.dtype)
                return carry

            # Fully unrolled in-kernel layer loop over the resident weights.
            jax.lax.fori_loop(0, n_h, hidden, 0, unroll=True)
            _output_layer(h_ref, w_out_ref, b_out_ref, o_ref)
    else:
        def kernel(x_ref, w_in_ref, b_in_ref, w_out_ref, b_out_ref,
                   o_ref, h_ref):
            _input_layer(x_ref, w_in_ref, b_in_ref, h_ref)
            _output_layer(h_ref, w_out_ref, b_out_ref, o_ref)

    return kernel


def _mlp_streamed_kernel(x_ref, w_in_ref, b_in_ref, w_h_ref, b_h_ref,
                         w_out_ref, b_out_ref, o_ref, h_ref):
    """Fallback for big models: grid = (batch_tile, layer); one (H,H) hidden
    slab is streamed (double-buffered by BlockSpec) per layer step while the
    running activation lives in VMEM scratch."""
    l = pl.program_id(1)
    last = pl.num_programs(1) - 1

    @pl.when(l == 0)
    def _():
        xv = x_ref[...].astype(w_in_ref.dtype)
        pre = jnp.dot(xv, w_in_ref[...], preferred_element_type=jnp.float32)
        h_ref[...] = jnp.tanh(pre + b_in_ref[...]).astype(h_ref.dtype)

    @pl.when(l > 0)
    def _():
        pre = jnp.dot(h_ref[...], w_h_ref[0],
                      preferred_element_type=jnp.float32)
        h_ref[...] = jnp.tanh(pre + b_h_ref[0]).astype(h_ref.dtype)

    @pl.when(l == last)
    def _():
        out = jnp.dot(h_ref[...], w_out_ref[...],
                      preferred_element_type=jnp.float32)
        o_ref[...] = (out + b_out_ref[...]).astype(o_ref.dtype)


# --------------------------------------------------------------------------
# Wrapper
# --------------------------------------------------------------------------
def net_forward(x, params, *, num_hidden_layers, block_batch=None,
                force_streamed=False):
    """Forward pass matching Net.forward for x of shape [batch, inputs]."""
    w_in, b_in, w_h, b_h, w_out, b_out = params
    assert x.ndim == 2 and num_hidden_layers >= 1
    batch, inputs = x.shape
    hidden = w_in.shape[1]
    outputs = w_out.shape[1]
    n_h = num_hidden_layers - 1

    w_item = jnp.dtype(w_in.dtype).itemsize
    # Cast x to the weight dtype: half-width x DMA for bf16 weights and the
    # in-kernel astype becomes a no-op.
    if x.dtype != w_in.dtype:
        x = x.astype(w_in.dtype)
    x_item = jnp.dtype(x.dtype).itemsize

    cap = _vmem_capacity_bytes()
    budget = int(cap * 0.85)            # headroom below physical VMEM

    # ---- VMEM footprints (x2 = BlockSpec double-buffering) ----------------
    small_w = 2 * (_vmem_array_bytes((inputs, hidden), w_item)
                   + _vmem_array_bytes((1, hidden), 4)
                   + _vmem_array_bytes((hidden, outputs), w_item)
                   + _vmem_array_bytes((1, outputs), 4))
    resident_w = small_w
    streamed_w = small_w
    if n_h > 0:
        resident_w += 2 * (_vmem_array_bytes((n_h, hidden, hidden), w_item)
                           + _vmem_array_bytes((n_h, 1, hidden), 4))
        streamed_w += 2 * (_vmem_array_bytes((1, hidden, hidden), w_item)
                           + _vmem_array_bytes((1, 1, hidden), 4))

    def per_tile(tb):
        return (2 * _vmem_array_bytes((tb, inputs), x_item)    # x tile
                + 2 * _vmem_array_bytes((tb, outputs), 4)      # out tile
                + _vmem_array_bytes((tb, hidden), w_item))     # h scratch

    # ---- pick the batch tile ----------------------------------------------
    bpad0 = _round_up(batch, 128)
    if block_batch is not None:
        tb_cap = max(128, _round_up(min(block_batch, bpad0), 128))
    else:
        tb_cap = min(512, bpad0)        # big tiles amortize grid overhead
    # Keep >= 2 batch tiles when the batch allows it so both TensorCores of a
    # 2-TC chip (v7x) get work; costs at most one extra grid step elsewhere.
    if bpad0 >= 256:
        tb_cap = min(tb_cap, max(128, (bpad0 // 2) // 128 * 128))

    def fit_tb(weight_bytes):
        tb = tb_cap
        while tb > 128 and weight_bytes + per_tile(tb) > budget:
            tb -= 128
        return tb, (weight_bytes + per_tile(tb) <= budget)

    tb, resident_ok = fit_tb(resident_w)
    use_resident = True
    if n_h > 0 and (force_streamed or not resident_ok):
        use_resident = False
        tb, _ = fit_tb(streamed_w)

    bpad = _round_up(batch, tb)
    if bpad != batch:
        x = jnp.pad(x, ((0, bpad - batch), (0, 0)))
    num_bt = bpad // tb

    est = (resident_w if use_resident else streamed_w) + per_tile(tb)
    vmem_limit = int(min(max(est + (4 << 20), 16 << 20), budget))

    out_shape = jax.ShapeDtypeStruct((bpad, outputs), jnp.float32)

    if use_resident:
        kernel = _make_resident_kernel(n_h)
        in_specs = [
            pl.BlockSpec((tb, inputs), lambda b: (b, 0)),
            pl.BlockSpec((inputs, hidden), lambda b: (0, 0)),
            pl.BlockSpec((1, hidden), lambda b: (0, 0)),
        ]
        args = [x, w_in, b_in]
        if n_h > 0:
            in_specs += [
                pl.BlockSpec((n_h, hidden, hidden), lambda b: (0, 0, 0)),
                pl.BlockSpec((n_h, 1, hidden), lambda b: (0, 0, 0)),
            ]
            args += [w_h[:n_h], b_h[:n_h]]
        in_specs += [
            pl.BlockSpec((hidden, outputs), lambda b: (0, 0)),
            pl.BlockSpec((1, outputs), lambda b: (0, 0)),
        ]
        args += [w_out, b_out]

        out_pad = pl.pallas_call(
            kernel,
            out_shape=out_shape,
            grid_spec=pltpu.PrefetchScalarGridSpec(
                num_scalar_prefetch=0,
                grid=(num_bt,),
                in_specs=in_specs,
                out_specs=pl.BlockSpec((tb, outputs), lambda b: (b, 0)),
                scratch_shapes=[pltpu.VMEM((tb, hidden), w_in.dtype)],
            ),
            compiler_params=pltpu.CompilerParams(
                dimension_semantics=("parallel",),
                vmem_limit_bytes=vmem_limit),
        )(*args)
    else:
        # Hidden-layer index used at layer step l (>=1) is l-1; at l == 0 the
        # slab is prefetched but unused.
        w_h_map = lambda b, l: (jnp.maximum(l - 1, 0), 0, 0)
        out_pad = pl.pallas_call(
            _mlp_streamed_kernel,
            out_shape=out_shape,
            grid_spec=pltpu.PrefetchScalarGridSpec(
                num_scalar_prefetch=0,
                grid=(num_bt, num_hidden_layers),
                in_specs=[
                    pl.BlockSpec((tb, inputs), lambda b, l: (b, 0)),
                    pl.BlockSpec((inputs, hidden), lambda b, l: (0, 0)),
                    pl.BlockSpec((1, hidden), lambda b, l: (0, 0)),
                    pl.BlockSpec((1, hidden, hidden), w_h_map),
                    pl.BlockSpec((1, 1, hidden), w_h_map),
                    pl.BlockSpec((hidden, outputs), lambda b, l: (0, 0)),
                    pl.BlockSpec((1, outputs), lambda b, l: (0, 0)),
                ],
                out_specs=pl.BlockSpec((tb, outputs), lambda b, l: (b, 0)),
                scratch_shapes=[pltpu.VMEM((tb, hidden), w_in.dtype)],
            ),
            compiler_params=pltpu.CompilerParams(
                dimension_semantics=("parallel", "arbitrary"),
                vmem_limit_bytes=vmem_limit),
        )(x, w_in, b_in, w_h, b_h, w_out, b_out)

    return out_pad[:batch]


# --------------------------------------------------------------------------
# Parameter init (mimics torch.nn.Linear default: uniform +/- 1/sqrt(fan_in)).
# Weights are stored kernel-friendly as [in, out] (nn.Linear stores [out, in]
# and computes x @ W.T + b, so this is the same map).  Biases stay f32.
# --------------------------------------------------------------------------
def init_params(key, inputs, num_hidden_units, num_hidden_layers, outputs=1,
                param_dtype=jnp.float32):
    ks = jax.random.split(key, 6)
    lim_in = float(inputs) ** -0.5
    lim_h = float(num_hidden_units) ** -0.5
    n_h = max(num_hidden_layers - 1, 1)

    w_in = jax.random.uniform(ks[0], (inputs, num_hidden_units), jnp.float32,
                              -lim_in, lim_in).astype(param_dtype)
    b_in = jax.random.uniform(ks[1], (1, num_hidden_units), jnp.float32,
                              -lim_in, lim_in)
    w_h = jax.random.uniform(ks[2],
                             (n_h, num_hidden_units, num_hidden_units),
                             jnp.float32, -lim_h, lim_h).astype(param_dtype)
    b_h = jax.random.uniform(ks[3], (n_h, 1, num_hidden_units), jnp.float32,
                             -lim_h, lim_h)
    w_out = jax.random.uniform(ks[4], (num_hidden_units, outputs), jnp.float32,
                               -lim_h, lim_h).astype(param_dtype)
    b_out = jax.random.uniform(ks[5], (1, outputs), jnp.float32,
                               -lim_h, lim_h)
    return w_in, b_in, w_h, b_h, w_out, b_out


# --------------------------------------------------------------------------
# Pure-JAX reference (PyTorch semantics: unsqueeze(1)->linears->squeeze(1),
# identical to applying the MLP to the flat [batch, features]).
# --------------------------------------------------------------------------
def net_forward_ref(x, params, *, num_hidden_layers, matmul_dtype=None):
    w_in, b_in, w_h, b_h, w_out, b_out = params

    def mm(a, w):
        if matmul_dtype is not None:
            a = a.astype(matmul_dtype)
            w = w.astype(matmul_dtype)
        return jnp.dot(a, w, preferred_element_type=jnp.float32)

    h = jnp.tanh(mm(x, w_in) + b_in)
    for i in range(num_hidden_layers - 1):
        h = jnp.tanh(mm(h, w_h[i]) + b_h[i])
    return mm(h, w_out) + b_out


# --------------------------------------------------------------------------
if __name__ == "__main__":
    key = jax.random.PRNGKey(0)

    def check(batch, inputs, hidden, layers, outputs, param_dtype, key,
              force_streamed=False, tol=2e-2):
        k_x, k_p, key = jax.random.split(key, 3)
        x = jax.random.normal(k_x, (batch, inputs), jnp.float32)
        params = init_params(k_p, inputs, hidden, layers, outputs,
                             param_dtype=param_dtype)
        out = jax.block_until_ready(
            net_forward(x, params, num_hidden_layers=layers,
                        force_streamed=force_streamed))
        mm_dt = None if param_dtype == jnp.float32 else param_dtype
        ref = net_forward_ref(x, params, num_hidden_layers=layers,
                              matmul_dtype=mm_dt)
        assert out.shape == (batch, outputs), out.shape
        assert jnp.allclose(out, ref, atol=tol, rtol=tol), \
            float(jnp.max(jnp.abs(out - ref)))
        return key

    # 1) Small f32 model: resident weights, single batch tile, 2 hidden layers.
    key = check(8, 4, 32, 3, 1, jnp.float32, key)
    # 2) bf16 weights: tb=512, two batch tiles, 3 resident hidden layers.
    key = check(1024, 4, 128, 4, 1, jnp.bfloat16, key)
    # 3) num_hidden_layers == 1: no hidden stack is passed / DMA'd at all.
    key = check(8, 4, 32, 1, 1, jnp.float32, key)
    # 4) Streamed fallback path (layer axis on the grid), forced for coverage.
    key = check(256, 4, 64, 3, 1, jnp.float32, key, force_streamed=True)

    print("KERNEL_OK")
</pallas_src>

<mosaic_0001>
module attributes {stable_mosaic.version = 11 : i64} {
  func.func @kernel(%arg0: i32, %arg1: memref<128x4xf32, #tpu.memory_space<vmem>>, %arg2: memref<4x32xf32, #tpu.memory_space<vmem>>, %arg3: memref<1x32xf32, #tpu.memory_space<vmem>>, %arg4: memref<2x32x32xf32, #tpu.memory_space<vmem>>, %arg5: memref<2x1x32xf32, #tpu.memory_space<vmem>>, %arg6: memref<32x1xf32, #tpu.memory_space<vmem>>, %arg7: memref<1x1xf32, #tpu.memory_space<vmem>>, %arg8: memref<128x1xf32, #tpu.memory_space<vmem>>, %arg9: memref<128x32xf32, #tpu.memory_space<vmem>>) attributes {dimension_semantics = [#tpu.dimension_semantics<parallel>], iteration_bounds = array<i64: 1>, scalar_prefetch = 0 : i64, scratch_operands = 1 : i64, tpu.core_type = #tpu.core_type<tc>, window_params = [{transform_indices = @transform_0, window_bounds = array<i64: 128, 4>}, {pipeline_mode = #tpu.pipeline_mode<synchronous>, transform_indices = @transform_1, window_bounds = array<i64: 4, 32>}, {pipeline_mode = #tpu.pipeline_mode<synchronous>, transform_indices = @transform_2, window_bounds = array<i64: 1, 32>}, {pipeline_mode = #tpu.pipeline_mode<synchronous>, transform_indices = @transform_3, window_bounds = array<i64: 2, 32, 32>}, {pipeline_mode = #tpu.pipeline_mode<synchronous>, transform_indices = @transform_4, window_bounds = array<i64: 2, 1, 32>}, {pipeline_mode = #tpu.pipeline_mode<synchronous>, transform_indices = @transform_5, window_bounds = array<i64: 32, 1>}, {pipeline_mode = #tpu.pipeline_mode<synchronous>, transform_indices = @transform_6, window_bounds = array<i64: 1, 1>}, {transform_indices = @transform_7, window_bounds = array<i64: 128, 1>}]} {
    %c0 = arith.constant 0 : index
    %c0_0 = arith.constant 0 : index
    %0 = vector.load %arg1[%c0, %c0_0] : memref<128x4xf32, #tpu.memory_space<vmem>>, vector<128x4xf32>
    %c0_1 = arith.constant 0 : index
    %c0_2 = arith.constant 0 : index
    %1 = vector.load %arg2[%c0_1, %c0_2] : memref<4x32xf32, #tpu.memory_space<vmem>>, vector<4x32xf32>
    %cst = arith.constant dense<0.000000e+00> : vector<128x32xf32>
    %2 = tpu.matmul %0, %1, %cst {dimension_numbers = #tpu.dot_dimension_numbers<[1], [0], [0], [1], [0, 0, 1, 1], [], []>} : vector<128x4xf32>, vector<4x32xf32>, vector<128x32xf32> -> vector<128x32xf32>
    %c0_3 = arith.constant 0 : index
    %c0_4 = arith.constant 0 : index
    %3 = vector.load %arg3[%c0_3, %c0_4] : memref<1x32xf32, #tpu.memory_space<vmem>>, vector<1x32xf32>
    %4 = vector.broadcast %3 : vector<1x32xf32> to vector<128x32xf32>
    %5 = arith.addf %2, %4 : vector<128x32xf32>
    %6 = math.tanh %5 : vector<128x32xf32>
    %c0_5 = arith.constant 0 : index
    %c0_6 = arith.constant 0 : index
    %7 = vector.load %arg9[%c0_5, %c0_6] : memref<128x32xf32, #tpu.memory_space<vmem>>, vector<128x32xf32>
    tpu.vector_store %arg9[%c0_5, %c0_6], %6 {strides = array<i32>} : memref<128x32xf32, #tpu.memory_space<vmem>>, vector<128x32xf32>,
    %c0_i32 = arith.constant 0 : i32
    %c0_7 = arith.constant 0 : index
    %c0_8 = arith.constant 0 : index
    %8 = vector.load %arg9[%c0_7, %c0_8] : memref<128x32xf32, #tpu.memory_space<vmem>>, vector<128x32xf32>
    %9 = arith.index_cast %c0_i32 : i32 to index
    %c0_9 = arith.constant 0 : index
    %c0_10 = arith.constant 0 : index
    %10 = vector.load %arg4[%9, %c0_9, %c0_10] : memref<2x32x32xf32, #tpu.memory_space<vmem>>, vector<1x32x32xf32>
    %11 = vector.shape_cast %10 : vector<1x32x32xf32> to vector<32x32xf32>
    %cst_11 = arith.constant dense<0.000000e+00> : vector<128x32xf32>
    %12 = tpu.matmul %8, %11, %cst_11 {dimension_numbers = #tpu.dot_dimension_numbers<[1], [0], [0], [1], [0, 0, 1, 1], [], []>} : vector<128x32xf32>, vector<32x32xf32>, vector<128x32xf32> -> vector<128x32xf32>
    %13 = arith.index_cast %c0_i32 : i32 to index
    %c0_12 = arith.constant 0 : index
    %c0_13 = arith.constant 0 : index
    %14 = vector.load %arg5[%13, %c0_12, %c0_13] : memref<2x1x32xf32, #tpu.memory_space<vmem>>, vector<1x1x32xf32>
    %15 = vector.shape_cast %14 : vector<1x1x32xf32> to vector<1x32xf32>
    %16 = vector.broadcast %15 : vector<1x32xf32> to vector<128x32xf32>
    %17 = arith.addf %12, %16 : vector<128x32xf32>
    %18 = math.tanh %17 : vector<128x32xf32>
    %c0_14 = arith.constant 0 : index
    %c0_15 = arith.constant 0 : index
    %19 = vector.load %arg9[%c0_14, %c0_15] : memref<128x32xf32, #tpu.memory_space<vmem>>, vector<128x32xf32>
    tpu.vector_store %arg9[%c0_14, %c0_15], %18 {strides = array<i32>} : memref<128x32xf32, #tpu.memory_space<vmem>>, vector<128x32xf32>,
    %c1_i32 = arith.constant 1 : i32
    %c0_16 = arith.constant 0 : index
    %c0_17 = arith.constant 0 : index
    %20 = vector.load %arg9[%c0_16, %c0_17] : memref<128x32xf32, #tpu.memory_space<vmem>>, vector<128x32xf32>
    %21 = arith.index_cast %c1_i32 : i32 to index
    %c0_18 = arith.constant 0 : index
    %c0_19 = arith.constant 0 : index
    %22 = vector.load %arg4[%21, %c0_18, %c0_19] : memref<2x32x32xf32, #tpu.memory_space<vmem>>, vector<1x32x32xf32>
    %23 = vector.shape_cast %22 : vector<1x32x32xf32> to vector<32x32xf32>
    %cst_20 = arith.constant dense<0.000000e+00> : vector<128x32xf32>
    %24 = tpu.matmul %20, %23, %cst_20 {dimension_numbers = #tpu.dot_dimension_numbers<[1], [0], [0], [1], [0, 0, 1, 1], [], []>} : vector<128x32xf32>, vector<32x32xf32>, vector<128x32xf32> -> vector<128x32xf32>
    %25 = arith.index_cast %c1_i32 : i32 to index
    %c0_21 = arith.constant 0 : index
    %c0_22 = arith.constant 0 : index
    %26 = vector.load %arg5[%25, %c0_21, %c0_22] : memref<2x1x32xf32, #tpu.memory_space<vmem>>, vector<1x1x32xf32>
    %27 = vector.shape_cast %26 : vector<1x1x32xf32> to vector<1x32xf32>
    %28 = vector.broadcast %27 : vector<1x32xf32> to vector<128x32xf32>
    %29 = arith.addf %24, %28 : vector<128x32xf32>
    %30 = math.tanh %29 : vector<128x32xf32>
    %c0_23 = arith.constant 0 : index
    %c0_24 = arith.constant 0 : index
    %31 = vector.load %arg9[%c0_23, %c0_24] : memref<128x32xf32, #tpu.memory_space<vmem>>, vector<128x32xf32>
    tpu.vector_store %arg9[%c0_23, %c0_24], %30 {strides = array<i32>} : memref<128x32xf32, #tpu.memory_space<vmem>>, vector<128x32xf32>,
    %c2_i32 = arith.constant 2 : i32
    %c0_25 = arith.constant 0 : index
    %c0_26 = arith.constant 0 : index
    %32 = vector.load %arg9[%c0_25, %c0_26] : memref<128x32xf32, #tpu.memory_space<vmem>>, vector<128x32xf32>
    %c0_27 = arith.constant 0 : index
    %c0_28 = arith.constant 0 : index
    %33 = vector.load %arg6[%c0_27, %c0_28] : memref<32x1xf32, #tpu.memory_space<vmem>>, vector<32x1xf32>
    %cst_29 = arith.constant dense<0.000000e+00> : vector<128x1xf32>
    %34 = tpu.matmul %32, %33, %cst_29 {dimension_numbers = #tpu.dot_dimension_numbers<[1], [0], [0], [1], [0, 0, 1, 1], [], []>} : vector<128x32xf32>, vector<32x1xf32>, vector<128x1xf32> -> vector<128x1xf32>
    %c0_30 = arith.constant 0 : index
    %c0_31 = arith.constant 0 : index
    %35 = vector.load %arg7[%c0_30, %c0_31] : memref<1x1xf32, #tpu.memory_space<vmem>>, vector<1x1xf32>
    %36 = vector.broadcast %35 : vector<1x1xf32> to vector<128x1xf32>
    %37 = arith.addf %34, %36 : vector<128x1xf32>
    %c0_32 = arith.constant 0 : index
    %c0_33 = arith.constant 0 : index
    %38 = vector.load %arg8[%c0_32, %c0_33] : memref<128x1xf32, #tpu.memory_space<vmem>>, vector<128x1xf32>
    tpu.vector_store %arg8[%c0_32, %c0_33], %37 {strides = array<i32>} : memref<128x1xf32, #tpu.memory_space<vmem>>, vector<128x1xf32>,
    return
  }
  func.func @transform_0(%arg0: i32) -> (i32, i32) {
    %c0_i32 = arith.constant 0 : i32
    %c0_i32_0 = arith.constant 0 : i32
    return %arg0, %c0_i32 : i32, i32
  }
  func.func @transform_1(%arg0: i32) -> (i32, i32) {
    %c0_i32 = arith.constant 0 : i32
    %c0_i32_0 = arith.constant 0 : i32
    %c0_i32_1 = arith.constant 0 : i32
    return %c0_i32, %c0_i32_0 : i32, i32
  }
  func.func @transform_2(%arg0: i32) -> (i32, i32) {
    %c0_i32 = arith.constant 0 : i32
    %c0_i32_0 = arith.constant 0 : i32
    %c0_i32_1 = arith.constant 0 : i32
    return %c0_i32, %c0_i32_0 : i32, i32
  }
  func.func @transform_3(%arg0: i32) -> (i32, i32, i32) {
    %c0_i32 = arith.constant 0 : i32
    %c0_i32_0 = arith.constant 0 : i32
    %c0_i32_1 = arith.constant 0 : i32
    %c0_i32_2 = arith.constant 0 : i32
    return %c0_i32, %c0_i32_0, %c0_i32_1 : i32, i32, i32
  }
  func.func @transform_4(%arg0: i32) -> (i32, i32, i32) {
    %c0_i32 = arith.constant 0 : i32
    %c0_i32_0 = arith.constant 0 : i32
    %c0_i32_1 = arith.constant 0 : i32
    %c0_i32_2 = arith.constant 0 : i32
    return %c0_i32, %c0_i32_0, %c0_i32_1 : i32, i32, i32
  }
  func.func @transform_5(%arg0: i32) -> (i32, i32) {
    %c0_i32 = arith.constant 0 : i32
    %c0_i32_0 = arith.constant 0 : i32
    %c0_i32_1 = arith.constant 0 : i32
    return %c0_i32, %c0_i32_0 : i32, i32
  }
  func.func @transform_6(%arg0: i32) -> (i32, i32) {
    %c0_i32 = arith.constant 0 : i32
    %c0_i32_0 = arith.constant 0 : i32
    %c0_i32_1 = arith.constant 0 : i32
    return %c0_i32, %c0_i32_0 : i32, i32
  }
  func.func @transform_7(%arg0: i32) -> (i32, i32) {
    %c0_i32 = arith.constant 0 : i32
    %c0_i32_0 = arith.constant 0 : i32
    return %arg0, %c0_i32 : i32, i32
  }
}

</mosaic_0001>

<bundles_post_ra>
// kernel: tpu_custom_call.1
= control target key start
LH: loop header
LB: loop body
LE: loop exit
PB: predicated region body
PF: predicated region fallthrough
CT: control target
= control target key end

     0   :  { %vm101_vm0 = vcmask 1043456   ;;  %vm52_vm1 = vcmask 31744   ;;  %vm266_vm2 = vcmask 261120   ;;  %vm1009_vm3 = vcmask 7168   ;;  %s1792_s1 = inlined_call_operand.vmem [shape: f32[4,32], index: 1, kind: input, shape index: {}]   ;;  %s1793_s0 = inlined_call_operand.vmem [shape: f32[128,4], index: 0, kind: input, shape index: {}]   ;;  %s1794_s3 = inlined_call_operand.vmem [shape: f32[2,32,32], index: 3, kind: input, shape index: {}]   ;;  %s1795_s2 = inlined_call_operand.vmem [shape: f32[1,32], index: 2, kind: input, shape index: {}]   ;;  %s1796_s5 = inlined_call_operand.vmem [shape: f32[32,1], index: 5, kind: input, shape index: {}]   ;;  %s1797_s4 = inlined_call_operand.vmem [shape: f32[2,1,32], index: 4, kind: input, shape index: {}]   ;;  %s1798_s6 = inlined_call_operand.<no memory space> [shape: f32[1,1], index: 6, kind: input, shape index: {}]   ;;  %s1799_s7 = inlined_call_operand.vmem [shape: f32[128,1], index: 7, kind: output, shape index: {}]  }
   0x1   :  { %v44_v0 = vld [vmem:[%s1792_s1] sm:$0xf]  ;;  %v29_v2 = vld [vmem:[%s1793_s0 + $0x8] sm:$0xff]  ;;  %v30_v3 = vld [vmem:[%s1793_s0 + $0x10] sm:$0xff] }
   0x2   :  { %v28_v1 = vld [vmem:[%s1793_s0] sm:$0xff]  ;;  %1181 = vmatprep.subr.msk.mxu0 %vm101_vm0, %v44_v0  ;;  %v31_v4 = vld [vmem:[%s1793_s0 + $0x18] sm:$0xff]  ;;  %v33_v6 = vld [vmem:[%s1793_s0 + $0x28] sm:$0xff] }
   0x3   :  { %1183 = vmatprep.mubr.msk.f32.mxu0 %vm52_vm1, %v28_v1  ;;  %1182 = vmatpush3.msk.msra.mxu0 %vm101_vm0, %v44_v0  ;;  %v32_v5 = vld [vmem:[%s1793_s0 + $0x20] sm:$0xff]  ;;  %v34_v7 = vld [vmem:[%s1793_s0 + $0x30] sm:$0xff]  ;;  %v35_v8 = vld [vmem:[%s1793_s0 + $0x38] sm:$0xff] }
   0x4   :  { %1184 = vmatmul.mubr.msk.f32.vlgmr.msra.gmra.mrb[0].mxu0 %vm52_vm1, %v29_v2  ;;  %v36_v9 = vld [vmem:[%s1793_s0 + $0x40] sm:$0xff]  ;;  %v37_v10 = vld [vmem:[%s1793_s0 + $0x48] sm:$0xff]  ;;  %v38_v11 = vld [vmem:[%s1793_s0 + $0x50] sm:$0xff] }
   0x5   :  { %1186 = vmatprep.mubr.msk.f32.mxu0 %vm52_vm1, %v30_v3  ;;  %v39_v12 = vld [vmem:[%s1793_s0 + $0x58] sm:$0xff]  ;;  %v40_v13 = vld [vmem:[%s1793_s0 + $0x60] sm:$0xff]  ;;  %v41_v14 = vld [vmem:[%s1793_s0 + $0x68] sm:$0xff] }
   0x6   :  { %v42_v15 = vld [vmem:[%s1793_s0 + $0x70] sm:$0xff]  ;;  %v43_v16 = vld [vmem:[%s1793_s0 + $0x78] sm:$0xff]  ;;  %v299_v17 = vld [vmem:[%s1794_s3] sm:$0xff] }
   0x7   :  { %v300_v18 = vld [vmem:[%s1794_s3 + $0x8] sm:$0xff]  ;;  %v301_v20 = vld [vmem:[%s1794_s3 + $0x10] sm:$0xff]  ;;  %v302_v21 = vld [vmem:[%s1794_s3 + $0x18] sm:$0xff] }
   0x8   :  { %1187 = vmatmul.mubr.msk.f32.gmra.mrb[2].mxu0 %vm52_vm1, %v31_v4  ;;  %v1303_v19 = vpack.c.bf16 %v300_v18, %v299_v17  ;;  %v1307_v22 = vpack.c.bf16 %v302_v21, %v301_v20  ;;  %v1065_v23 = vld [vmem:[%s1794_s3 + $0x20] sm:$0xff]  ;;  %v1066_v24 = vld [vmem:[%s1794_s3 + $0x28] sm:$0xff] }
   0x9   :  { %1189 = vmatprep.mubr.msk.f32.mxu0 %vm52_vm1, %v32_v5  ;;  %v1311_v25 = vpack.c.bf16 %v1066_v24, %v1065_v23  ;;  %v1551_v26 = vld [vmem:[%s1795_s2] ss:$0 sm:$0xff] }
   0xa   :  { %1304 = vmatprep.subr.bf16.mxu1 %v1303_v19 }
   0xb   :  { %1306 = vmatpush3.bf16.msra.mxu1 %v1303_v19  ;;  %1312 = vmatprep.subr.bf16.mxu0 %v1311_v25 }
   0xc   :  { %1190 = vmatmul.mubr.msk.f32.gmra.mrb[4].mxu0 %vm52_vm1, %v33_v6  ;;  %1308 = vmatprep.subr.bf16.mxu1 %v1307_v22 }
   0xd   :  { %1192 = vmatprep.mubr.msk.f32.mxu0 %vm52_vm1, %v34_v7  ;;  %1314 = vmatpush3.bf16.msra.mxu0 %v1311_v25 }
   0xf   :  { %1310 = vmatpush3.bf16.msra.mxu1 %v1307_v22 }
  0x10   :  { %1193 = vmatmul.mubr.msk.f32.gmra.mrb[6].mxu0 %vm52_vm1, %v35_v8 }
  0x11   :  { %1195 = vmatprep.mubr.msk.f32.mxu0 %vm52_vm1, %v36_v9 }
  0x14   :  { %1196 = vmatmul.mubr.msk.f32.gmra.mrb[8].mxu0 %vm52_vm1, %v37_v10 }
  0x15   :  { %1198 = vmatprep.mubr.msk.f32.mxu0 %vm52_vm1, %v38_v11 }
  0x18   :  { %1199 = vmatmul.mubr.msk.f32.gmra.mrb[10].mxu0 %vm52_vm1, %v39_v12 }
  0x19   :  { %1201 = vmatprep.mubr.msk.f32.mxu0 %vm52_vm1, %v40_v13 }
  0x1c   :  { %1202 = vmatmul.mubr.msk.f32.gmra.mrb[12].mxu0 %vm52_vm1, %v41_v14 }
  0x1d   :  { %1204 = vmatprep.mubr.msk.f32.mxu0 %vm52_vm1, %v42_v15 }
  0x20   :  { %1205 = vmatmul.mubr.msk.f32.gmra.mrb[14].mxu0 %vm52_vm1, %v43_v16 }
  0xd7   :  { %v1185_v27 = vpop.f32.mrb[0].mxu0 }
  0xd8   :  { %v177_v28 = vadd.f32 %v1185_v27, %v1551_v26  ;;  %v171_v29 = vpop.f32.mrb[1].mxu0  ;;  %v1067_v27 = vld [vmem:[%s1794_s3 + $0x30] sm:$0xff] }
  0xd9   :  { %v172_v30 = vadd.f32 %v1551_v26, %v171_v29 }
  0xda   :  { %1327 = vtanh.f32 %v177_v28  ;;  %v1068_v28 = vld [vmem:[%s1794_s3 + $0x38] sm:$0xff] }
  0xdb   :  { %1329 = vtanh.f32 %v172_v30  ;;  %v1188_v31 = vpop.f32.mrb[2].mxu0  ;;  %v1315_v29 = vpack.c.bf16 %v1068_v28, %v1067_v27  ;;  %v805_v30 = vld [vmem:[%s1796_s5] sm:$0xff] }
  0xdc   :  { %v187_v32 = vadd.f32 %v1188_v31, %v1551_v26  ;;  %v181_v33 = vpop.f32.mrb[3].mxu0  ;;  %v806_v31 = vld [vmem:[%s1796_s5 + $0x8] sm:$0xff] }
  0xdd   :  { %v182_v34 = vadd.f32 %v1551_v26, %v181_v33  ;;  %1316 = vmatprep.subr.bf16.mxu0 %v1315_v29  ;;  %v1616_v33 = vld [vmem:[%s1797_s4] ss:$0 sm:$0xff] }
  0xde   :  { %1331 = vtanh.f32 %v187_v32  ;;  %1318 = vmatpush3.bf16.msra.mxu0 %v1315_v29  ;;  %v1319_v32 = vpack.c.bf16 %v806_v31, %v805_v30 }
  0xdf   :  { %1333 = vtanh.f32 %v182_v34  ;;  %v1191_v35 = vpop.f32.mrb[4].mxu0 }
  0xe0   :  { %v197_v36 = vadd.f32 %v1191_v35, %v1551_v26  ;;  %v191_v37 = vpop.f32.mrb[5].mxu0  ;;  %1320 = vmatprep.subr.bf16.mxu1 %v1319_v32 }
  0xe1   :  { %v192_v38 = vadd.f32 %v1551_v26, %v191_v37 }
  0xe2   :  { %1335 = vtanh.f32 %v197_v36 }
  0xe3   :  { %1337 = vtanh.f32 %v192_v38  ;;  %v1194_v39 = vpop.f32.mrb[6].mxu0 }
  0xe4   :  { %v1328_v40 = vpop.eup %1327  ;;  %v207_v41 = vadd.f32 %v1194_v39, %v1551_v26  ;;  %v201_v42 = vpop.f32.mrb[7].mxu0 }
  0xe5   :  { %v1330_v43 = vpop.eup %1329  ;;  %268 = vst.msk [vmem:[#allocation2 + $0x8] sm:$0xff] %vm266_vm2, %v1328_v40  ;;  %v202_v44 = vadd.f32 %v1551_v26, %v201_v42 }
  0xe6   :  { %267 = vst.msk [vmem:[#allocation2] sm:$0xff] %vm266_vm2, %v1330_v43  ;;  %1339 = vtanh.f32 %v207_v41 }
  0xe7   :  { %1341 = vtanh.f32 %v202_v44  ;;  %v1197_v45 = vpop.f32.mrb[8].mxu0 }
  0xe8   :  { %v1332_v46 = vpop.eup %1331  ;;  %v217_v47 = vadd.f32 %v1197_v45, %v1551_v26  ;;  %v211_v48 = vpop.f32.mrb[9].mxu0 }
  0xe9   :  { %v1334_v49 = vpop.eup %1333  ;;  %270 = vst.msk [vmem:[#allocation2 + $0x18] sm:$0xff] %vm266_vm2, %v1332_v46  ;;  %v212_v50 = vadd.f32 %v1551_v26, %v211_v48 }
  0xea   :  { %269 = vst.msk [vmem:[#allocation2 + $0x10] sm:$0xff] %vm266_vm2, %v1334_v49  ;;  %1343 = vtanh.f32 %v217_v47 }
  0xeb   :  { %1345 = vtanh.f32 %v212_v50  ;;  %v1200_v51 = vpop.f32.mrb[10].mxu0 }
  0xec   :  { %v1336_v52 = vpop.eup %1335  ;;  %v227_v53 = vadd.f32 %v1200_v51, %v1551_v26  ;;  %v221_v54 = vpop.f32.mrb[11].mxu0  ;;  %v284_v58 = vld [vmem:[#allocation2 + $0x8] sm:$0xff] }
  0xed   :  { %v1338_v55 = vpop.eup %1337  ;;  %272 = vst.msk [vmem:[#allocation2 + $0x28] sm:$0xff] %vm266_vm2, %v1336_v52  ;;  %v222_v56 = vadd.f32 %v1551_v26, %v221_v54  ;;  %v283_v57 = vld [vmem:[#allocation2] sm:$0xff] }
  0xee   :  { %271 = vst.msk [vmem:[#allocation2 + $0x20] sm:$0xff] %vm266_vm2, %v1338_v55  ;;  %1347 = vtanh.f32 %v227_v53  ;;  %1215 = vmatprep.mubr.msk.f32.mxu1 %vm266_vm2, %v283_v57 }
  0xef   :  { %1349 = vtanh.f32 %v222_v56  ;;  %v1203_v59 = vpop.f32.mrb[12].mxu0  ;;  %1216 = vmatmul.mubr.msk.f32.vlgmr.msra.gmra.mrb[0].mxu1 %vm266_vm2, %v284_v58 }
  0xf0   :  { %v1340_v60 = vpop.eup %1339  ;;  %v237_v61 = vadd.f32 %v1203_v59, %v1551_v26  ;;  %v231_v62 = vpop.f32.mrb[13].mxu0  ;;  %v286_v2 = vld [vmem:[#allocation2 + $0x18] sm:$0xff]  ;;  %1322 = vmatpush3.bf16.msra.mxu1 %v1319_v32 }
  0xf1   :  { %v1342_v63 = vpop.eup %1341  ;;  %274 = vst.msk [vmem:[#allocation2 + $0x38] sm:$0xff] %vm266_vm2, %v1340_v60  ;;  %v232_v0 = vadd.f32 %v1551_v26, %v231_v62  ;;  %v285_v1 = vld [vmem:[#allocation2 + $0x10] sm:$0xff] }
  0xf2   :  { %273 = vst.msk [vmem:[#allocation2 + $0x30] sm:$0xff] %vm266_vm2, %v1342_v63  ;;  %1351 = vtanh.f32 %v237_v61  ;;  %1218 = vmatprep.mubr.msk.f32.mxu1 %vm266_vm2, %v285_v1 }
  0xf3   :  { %1353 = vtanh.f32 %v232_v0  ;;  %v1206_v3 = vpop.f32.mrb[14].mxu0  ;;  %1219 = vmatmul.mubr.msk.f32.gmra.mrb[2].mxu1 %vm266_vm2, %v286_v2 }
  0xf4   :  { %v1344_v4 = vpop.eup %1343  ;;  %v247_v5 = vadd.f32 %v1206_v3, %v1551_v26  ;;  %v241_v6 = vpop.f32.mrb[15].mxu0  ;;  %v288_v10 = vld [vmem:[#allocation2 + $0x28] sm:$0xff] }
  0xf5   :  { %v1346_v7 = vpop.eup %1345  ;;  %276 = vst.msk [vmem:[#allocation2 + $0x48] sm:$0xff] %vm266_vm2, %v1344_v4  ;;  %v242_v8 = vadd.f32 %v1551_v26, %v241_v6  ;;  %v287_v9 = vld [vmem:[#allocation2 + $0x20] sm:$0xff] }
  0xf6   :  { %275 = vst.msk [vmem:[#allocation2 + $0x40] sm:$0xff] %vm266_vm2, %v1346_v7  ;;  %1355 = vtanh.f32 %v247_v5  ;;  %1221 = vmatprep.mubr.msk.f32.mxu1 %vm266_vm2, %v287_v9 }
  0xf7   :  { %1357 = vtanh.f32 %v242_v8  ;;  %1222 = vmatmul.mubr.msk.f32.gmra.mrb[4].mxu1 %vm266_vm2, %v288_v10 }
  0xf8   :  { %v1348_v11 = vpop.eup %1347  ;;  %v290_v14 = vld [vmem:[#allocation2 + $0x38] sm:$0xff] }
  0xf9   :  { %v1350_v12 = vpop.eup %1349  ;;  %278 = vst.msk [vmem:[#allocation2 + $0x58] sm:$0xff] %vm266_vm2, %v1348_v11  ;;  %v289_v13 = vld [vmem:[#allocation2 + $0x30] sm:$0xff] }
  0xfa   :  { %277 = vst.msk [vmem:[#allocation2 + $0x50] sm:$0xff] %vm266_vm2, %v1350_v12  ;;  %1224 = vmatprep.mubr.msk.f32.mxu1 %vm266_vm2, %v289_v13 }
  0xfb   :  { %1225 = vmatmul.mubr.msk.f32.gmra.mrb[6].mxu1 %vm266_vm2, %v290_v14 }
  0xfc   :  { %v1352_v15 = vpop.eup %1351  ;;  %v292_v18 = vld [vmem:[#allocation2 + $0x48] sm:$0xff] }
  0xfd   :  { %v1354_v16 = vpop.eup %1353  ;;  %280 = vst.msk [vmem:[#allocation2 + $0x68] sm:$0xff] %vm266_vm2, %v1352_v15  ;;  %v291_v17 = vld [vmem:[#allocation2 + $0x40] sm:$0xff] }
  0xfe   :  { %279 = vst.msk [vmem:[#allocation2 + $0x60] sm:$0xff] %vm266_vm2, %v1354_v16  ;;  %1227 = vmatprep.mubr.msk.f32.mxu1 %vm266_vm2, %v291_v17 }
  0xff   :  { %1228 = vmatmul.mubr.msk.f32.gmra.mrb[8].mxu1 %vm266_vm2, %v292_v18 }
 0x100   :  { %v1356_v19 = vpop.eup %1355  ;;  %v294_v22 = vld [vmem:[#allocation2 + $0x58] sm:$0xff] }
 0x101   :  { %v1358_v20 = vpop.eup %1357  ;;  %282 = vst.msk [vmem:[#allocation2 + $0x78] sm:$0xff] %vm266_vm2, %v1356_v19  ;;  %v293_v21 = vld [vmem:[#allocation2 + $0x50] sm:$0xff] }
 0x102   :  { %281 = vst.msk [vmem:[#allocation2 + $0x70] sm:$0xff] %vm266_vm2, %v1358_v20  ;;  %1230 = vmatprep.mubr.msk.f32.mxu1 %vm266_vm2, %v293_v21 }
 0x103   :  { %1231 = vmatmul.mubr.msk.f32.gmra.mrb[10].mxu1 %vm266_vm2, %v294_v22 }
 0x104   :  { %v296_v24 = vld [vmem:[#allocation2 + $0x68] sm:$0xff] }
 0x105   :  { %v295_v23 = vld [vmem:[#allocation2 + $0x60] sm:$0xff] }
 0x106   :  { %1233 = vmatprep.mubr.msk.f32.mxu1 %vm266_vm2, %v295_v23 }
 0x107   :  { %1234 = vmatmul.mubr.msk.f32.gmra.mrb[12].mxu1 %vm266_vm2, %v296_v24 }
 0x108   :  { %v298_v26 = vld [vmem:[#allocation2 + $0x78] sm:$0xff] }
 0x109   :  { %v297_v25 = vld [vmem:[#allocation2 + $0x70] sm:$0xff] }
 0x10a   :  { %1236 = vmatprep.mubr.msk.f32.mxu1 %vm266_vm2, %v297_v25 }
 0x10b   :  { %1237 = vmatmul.mubr.msk.f32.gmra.mrb[14].mxu1 %vm266_vm2, %v298_v26 }
 0x1c2   :  { %v1217_v34 = vpop.f32.mrb[0].mxu1 }
 0x1c3   :  { %v430_v35 = vadd.f32 %v1217_v34, %v1616_v33  ;;  %v424_v36 = vpop.f32.mrb[1].mxu1  ;;  %v807_v34 = vld [vmem:[%s1796_s5 + $0x10] sm:$0xff] }
 0x1c4   :  { %v425_v37 = vadd.f32 %v1616_v33, %v424_v36 }
 0x1c5   :  { %1359 = vtanh.f32 %v430_v35  ;;  %v808_v35 = vld [vmem:[%s1796_s5 + $0x18] sm:$0xff] }
 0x1c6   :  { %1361 = vtanh.f32 %v425_v37  ;;  %v1220_v38 = vpop.f32.mrb[2].mxu1  ;;  %v1323_v36 = vpack.c.bf16 %v808_v35, %v807_v34  ;;  %v12_v37 = vstv %s1798_s6 }
 0x1c7   :  { %v440_v39 = vadd.f32 %v1220_v38, %v1616_v33  ;;  %v434_v40 = vpop.f32.mrb[3].mxu1  ;;  %13 = vst [vmem:[#allocation3] sm:$0x1] %v12_v37  ;;  %v1678_v38 = vld [vmem:[%s1797_s4 + $0x1] ss:$0 sm:$0xff] }
 0x1c8   :  { %v435_v41 = vadd.f32 %v1616_v33, %v434_v40  ;;  %1324 = vmatprep.subr.bf16.mxu1 %v1323_v36 }
 0x1c9   :  { %1363 = vtanh.f32 %v440_v39  ;;  %1326 = vmatpush3.bf16.msra.mxu1 %v1323_v36 }
 0x1ca   :  { %1365 = vtanh.f32 %v435_v41  ;;  %v1223_v42 = vpop.f32.mrb[4].mxu1 }
 0x1cb   :  { %v450_v43 = vadd.f32 %v1223_v42, %v1616_v33  ;;  %v444_v44 = vpop.f32.mrb[5].mxu1 }
 0x1cc   :  { %v445_v45 = vadd.f32 %v1616_v33, %v444_v44 }
 0x1cd   :  { %1367 = vtanh.f32 %v450_v43 }
 0x1ce   :  { %1369 = vtanh.f32 %v445_v45  ;;  %v1226_v46 = vpop.f32.mrb[6].mxu1 }
 0x1cf   :  { %v1360_v47 = vpop.eup %1359  ;;  %v460_v48 = vadd.f32 %v1226_v46, %v1616_v33  ;;  %v454_v49 = vpop.f32.mrb[7].mxu1 }
 0x1d0   :  { %v1362_v50 = vpop.eup %1361  ;;  %520 = vst.msk [vmem:[#allocation2 + $0x8] sm:$0xff] %vm266_vm2, %v1360_v47  ;;  %v455_v51 = vadd.f32 %v1616_v33, %v454_v49 }
 0x1d1   :  { %519 = vst.msk [vmem:[#allocation2] sm:$0xff] %vm266_vm2, %v1362_v50  ;;  %1371 = vtanh.f32 %v460_v48 }
 0x1d2   :  { %1373 = vtanh.f32 %v455_v51  ;;  %v1229_v52 = vpop.f32.mrb[8].mxu1 }
 0x1d3   :  { %v1364_v53 = vpop.eup %1363  ;;  %v470_v54 = vadd.f32 %v1229_v52, %v1616_v33  ;;  %v464_v55 = vpop.f32.mrb[9].mxu1 }
 0x1d4   :  { %v1366_v56 = vpop.eup %1365  ;;  %522 = vst.msk [vmem:[#allocation2 + $0x18] sm:$0xff] %vm266_vm2, %v1364_v53  ;;  %v465_v57 = vadd.f32 %v1616_v33, %v464_v55 }
 0x1d5   :  { %521 = vst.msk [vmem:[#allocation2 + $0x10] sm:$0xff] %vm266_vm2, %v1366_v56  ;;  %1375 = vtanh.f32 %v470_v54 }
 0x1d6   :  { %1377 = vtanh.f32 %v465_v57  ;;  %v1232_v58 = vpop.f32.mrb[10].mxu1 }
 0x1d7   :  { %v1368_v59 = vpop.eup %1367  ;;  %v480_v60 = vadd.f32 %v1232_v58, %v1616_v33  ;;  %v474_v61 = vpop.f32.mrb[11].mxu1  ;;  %v536_v1 = vld [vmem:[#allocation2 + $0x8] sm:$0xff] }
 0x1d8   :  { %v1370_v62 = vpop.eup %1369  ;;  %524 = vst.msk [vmem:[#allocation2 + $0x28] sm:$0xff] %vm266_vm2, %v1368_v59  ;;  %v475_v63 = vadd.f32 %v1616_v33, %v474_v61  ;;  %v535_v0 = vld [vmem:[#allocation2] sm:$0xff] }
 0x1d9   :  { %523 = vst.msk [vmem:[#allocation2 + $0x20] sm:$0xff] %vm266_vm2, %v1370_v62  ;;  %1379 = vtanh.f32 %v480_v60  ;;  %1247 = vmatprep.mubr.msk.f32.mxu0 %vm266_vm2, %v535_v0 }
 0x1da   :  { %1381 = vtanh.f32 %v475_v63  ;;  %v1235_v2 = vpop.f32.mrb[12].mxu1  ;;  %1248 = vmatmul.mubr.msk.f32.vlgmr.msra.gmra.mrb[16].mxu0 %vm266_vm2, %v536_v1 }
 0x1db   :  { %v1372_v3 = vpop.eup %1371  ;;  %v490_v4 = vadd.f32 %v1235_v2, %v1616_v33  ;;  %v484_v5 = vpop.f32.mrb[13].mxu1  ;;  %v538_v9 = vld [vmem:[#allocation2 + $0x18] sm:$0xff] }
 0x1dc   :  { %v1374_v6 = vpop.eup %1373  ;;  %526 = vst.msk [vmem:[#allocation2 + $0x38] sm:$0xff] %vm266_vm2, %v1372_v3  ;;  %v485_v7 = vadd.f32 %v1616_v33, %v484_v5  ;;  %v537_v8 = vld [vmem:[#allocation2 + $0x10] sm:$0xff] }
 0x1dd   :  { %525 = vst.msk [vmem:[#allocation2 + $0x30] sm:$0xff] %vm266_vm2, %v1374_v6  ;;  %1383 = vtanh.f32 %v490_v4  ;;  %1250 = vmatprep.mubr.msk.f32.mxu0 %vm266_vm2, %v537_v8 }
 0x1de   :  { %1385 = vtanh.f32 %v485_v7  ;;  %v1238_v10 = vpop.f32.mrb[14].mxu1  ;;  %1251 = vmatmul.mubr.msk.f32.gmra.mrb[18].mxu0 %vm266_vm2, %v538_v9 }
 0x1df   :  { %v1376_v11 = vpop.eup %1375  ;;  %v500_v12 = vadd.f32 %v1238_v10, %v1616_v33  ;;  %v494_v13 = vpop.f32.mrb[15].mxu1  ;;  %v540_v17 = vld [vmem:[#allocation2 + $0x28] sm:$0xff] }
 0x1e0   :  { %v1378_v14 = vpop.eup %1377  ;;  %528 = vst.msk [vmem:[#allocation2 + $0x48] sm:$0xff] %vm266_vm2, %v1376_v11  ;;  %v495_v15 = vadd.f32 %v1616_v33, %v494_v13  ;;  %v539_v16 = vld [vmem:[#allocation2 + $0x20] sm:$0xff] }
 0x1e1   :  { %527 = vst.msk [vmem:[#allocation2 + $0x40] sm:$0xff] %vm266_vm2, %v1378_v14  ;;  %1387 = vtanh.f32 %v500_v12  ;;  %1253 = vmatprep.mubr.msk.f32.mxu0 %vm266_vm2, %v539_v16 }
 0x1e2   :  { %1389 = vtanh.f32 %v495_v15  ;;  %1254 = vmatmul.mubr.msk.f32.gmra.mrb[20].mxu0 %vm266_vm2, %v540_v17 }
 0x1e3   :  { %v1380_v18 = vpop.eup %1379  ;;  %v542_v21 = vld [vmem:[#allocation2 + $0x38] sm:$0xff] }
 0x1e4   :  { %v1382_v19 = vpop.eup %1381  ;;  %530 = vst.msk [vmem:[#allocation2 + $0x58] sm:$0xff] %vm266_vm2, %v1380_v18  ;;  %v541_v20 = vld [vmem:[#allocation2 + $0x30] sm:$0xff] }
 0x1e5   :  { %529 = vst.msk [vmem:[#allocation2 + $0x50] sm:$0xff] %vm266_vm2, %v1382_v19  ;;  %1256 = vmatprep.mubr.msk.f32.mxu0 %vm266_vm2, %v541_v20 }
 0x1e6   :  { %1257 = vmatmul.mubr.msk.f32.gmra.mrb[22].mxu0 %vm266_vm2, %v542_v21 }
 0x1e7   :  { %v1384_v22 = vpop.eup %1383  ;;  %v544_v25 = vld [vmem:[#allocation2 + $0x48] sm:$0xff] }
 0x1e8   :  { %v1386_v23 = vpop.eup %1385  ;;  %532 = vst.msk [vmem:[#allocation2 + $0x68] sm:$0xff] %vm266_vm2, %v1384_v22  ;;  %v543_v24 = vld [vmem:[#allocation2 + $0x40] sm:$0xff] }
 0x1e9   :  { %531 = vst.msk [vmem:[#allocation2 + $0x60] sm:$0xff] %vm266_vm2, %v1386_v23  ;;  %1259 = vmatprep.mubr.msk.f32.mxu0 %vm266_vm2, %v543_v24 }
 0x1ea   :  { %1260 = vmatmul.mubr.msk.f32.gmra.mrb[24].mxu0 %vm266_vm2, %v544_v25 }
 0x1eb   :  { %v1388_v26 = vpop.eup %1387  ;;  %v546_v29 = vld [vmem:[#allocation2 + $0x58] sm:$0xff] }
 0x1ec   :  { %v1390_v27 = vpop.eup %1389  ;;  %534 = vst.msk [vmem:[#allocation2 + $0x78] sm:$0xff] %vm266_vm2, %v1388_v26  ;;  %v545_v28 = vld [vmem:[#allocation2 + $0x50] sm:$0xff] }
 0x1ed   :  { %533 = vst.msk [vmem:[#allocation2 + $0x70] sm:$0xff] %vm266_vm2, %v1390_v27  ;;  %1262 = vmatprep.mubr.msk.f32.mxu0 %vm266_vm2, %v545_v28 }
 0x1ee   :  { %1263 = vmatmul.mubr.msk.f32.gmra.mrb[26].mxu0 %vm266_vm2, %v546_v29 }
 0x1ef   :  { %v548_v31 = vld [vmem:[#allocation2 + $0x68] sm:$0xff] }
 0x1f0   :  { %v547_v30 = vld [vmem:[#allocation2 + $0x60] sm:$0xff] }
 0x1f1   :  { %1265 = vmatprep.mubr.msk.f32.mxu0 %vm266_vm2, %v547_v30 }
 0x1f2   :  { %1266 = vmatmul.mubr.msk.f32.gmra.mrb[28].mxu0 %vm266_vm2, %v548_v31 }
 0x1f3   :  { %v550_v33 = vld [vmem:[#allocation2 + $0x78] sm:$0xff] }
 0x1f4   :  { %v549_v32 = vld [vmem:[#allocation2 + $0x70] sm:$0xff] }
 0x1f5   :  { %1268 = vmatprep.mubr.msk.f32.mxu0 %vm266_vm2, %v549_v32 }
 0x1f6   :  { %1269 = vmatmul.mubr.msk.f32.gmra.mrb[30].mxu0 %vm266_vm2, %v550_v33 }
 0x2ad   :  { %v1249_v39 = vpop.f32.mrb[16].mxu0 }
 0x2ae   :  { %v684_v40 = vadd.f32 %v1249_v39, %v1678_v38  ;;  %v678_v41 = vpop.f32.mrb[17].mxu0  ;;  %v1087_v39 = vld [vmem:[#allocation3] ss:$0 sm:$0xff] }
 0x2af   :  { %v679_v42 = vadd.f32 %v1678_v38, %v678_v41 }
 0x2b0   :  { %1391 = vtanh.f32 %v684_v40 }
 0x2b1   :  { %1393 = vtanh.f32 %v679_v42  ;;  %v1252_v43 = vpop.f32.mrb[18].mxu0 }
 0x2b2   :  { %v694_v44 = vadd.f32 %v1252_v43, %v1678_v38  ;;  %v688_v45 = vpop.f32.mrb[19].mxu0 }
 0x2b3   :  { %v689_v46 = vadd.f32 %v1678_v38, %v688_v45 }
 0x2b4   :  { %1395 = vtanh.f32 %v694_v44 }
 0x2b5   :  { %1397 = vtanh.f32 %v689_v46  ;;  %v1255_v47 = vpop.f32.mrb[20].mxu0 }
 0x2b6   :  { %v704_v48 = vadd.f32 %v1255_v47, %v1678_v38  ;;  %v698_v49 = vpop.f32.mrb[21].mxu0 }
 0x2b7   :  { %v699_v50 = vadd.f32 %v1678_v38, %v698_v49 }
 0x2b8   :  { %1399 = vtanh.f32 %v704_v48 }
 0x2b9   :  { %1401 = vtanh.f32 %v699_v50  ;;  %v1258_v51 = vpop.f32.mrb[22].mxu0 }
 0x2ba   :  { %v1392_v52 = vpop.eup %1391  ;;  %v714_v53 = vadd.f32 %v1258_v51, %v1678_v38  ;;  %v708_v54 = vpop.f32.mrb[23].mxu0 }
 0x2bb   :  { %v1394_v55 = vpop.eup %1393  ;;  %774 = vst.msk [vmem:[#allocation2 + $0x8] sm:$0xff] %vm266_vm2, %v1392_v52  ;;  %v709_v56 = vadd.f32 %v1678_v38, %v708_v54 }
 0x2bc   :  { %773 = vst.msk [vmem:[#allocation2] sm:$0xff] %vm266_vm2, %v1394_v55  ;;  %1403 = vtanh.f32 %v714_v53 }
 0x2bd   :  { %1405 = vtanh.f32 %v709_v56  ;;  %v1261_v57 = vpop.f32.mrb[24].mxu0 }
 0x2be   :  { %v1396_v58 = vpop.eup %1395  ;;  %v724_v59 = vadd.f32 %v1261_v57, %v1678_v38  ;;  %v718_v60 = vpop.f32.mrb[25].mxu0 }
 0x2bf   :  { %v1398_v61 = vpop.eup %1397  ;;  %776 = vst.msk [vmem:[#allocation2 + $0x18] sm:$0xff] %vm266_vm2, %v1396_v58  ;;  %v719_v62 = vadd.f32 %v1678_v38, %v718_v60 }
 0x2c0   :  { %775 = vst.msk [vmem:[#allocation2 + $0x10] sm:$0xff] %vm266_vm2, %v1398_v61  ;;  %1407 = vtanh.f32 %v724_v59 }
 0x2c1   :  { %1409 = vtanh.f32 %v719_v62  ;;  %v1264_v63 = vpop.f32.mrb[26].mxu0 }
 0x2c2   :  { %v1400_v0 = vpop.eup %1399  ;;  %v734_v1 = vadd.f32 %v1264_v63, %v1678_v38  ;;  %v728_v2 = vpop.f32.mrb[27].mxu0  ;;  %v790_v6 = vld [vmem:[#allocation2 + $0x8] sm:$0xff] }
 0x2c3   :  { %v1402_v3 = vpop.eup %1401  ;;  %778 = vst.msk [vmem:[#allocation2 + $0x28] sm:$0xff] %vm266_vm2, %v1400_v0  ;;  %v729_v4 = vadd.f32 %v1678_v38, %v728_v2  ;;  %v789_v5 = vld [vmem:[#allocation2] sm:$0xff] }
 0x2c4   :  { %777 = vst.msk [vmem:[#allocation2 + $0x20] sm:$0xff] %vm266_vm2, %v1402_v3  ;;  %1411 = vtanh.f32 %v734_v1  ;;  %1279 = vmatprep.mubr.msk.f32.mxu1 %vm266_vm2, %v789_v5 }
 0x2c5   :  { %1413 = vtanh.f32 %v729_v4  ;;  %v1267_v7 = vpop.f32.mrb[28].mxu0  ;;  %1280 = vmatmul.mubr.msk.f32.vlgmr.msra.gmra.mrb[16].mxu1 %vm266_vm2, %v790_v6 }
 0x2c6   :  { %v1404_v8 = vpop.eup %1403  ;;  %v744_v9 = vadd.f32 %v1267_v7, %v1678_v38  ;;  %v738_v10 = vpop.f32.mrb[29].mxu0  ;;  %v792_v14 = vld [vmem:[#allocation2 + $0x18] sm:$0xff] }
 0x2c7   :  { %v1406_v11 = vpop.eup %1405  ;;  %780 = vst.msk [vmem:[#allocation2 + $0x38] sm:$0xff] %vm266_vm2, %v1404_v8  ;;  %v739_v12 = vadd.f32 %v1678_v38, %v738_v10  ;;  %v791_v13 = vld [vmem:[#allocation2 + $0x10] sm:$0xff] }
 0x2c8   :  { %779 = vst.msk [vmem:[#allocation2 + $0x30] sm:$0xff] %vm266_vm2, %v1406_v11  ;;  %1415 = vtanh.f32 %v744_v9  ;;  %1282 = vmatprep.mubr.msk.f32.mxu1 %vm266_vm2, %v791_v13 }
 0x2c9   :  { %1417 = vtanh.f32 %v739_v12  ;;  %v1270_v15 = vpop.f32.mrb[30].mxu0  ;;  %1283 = vmatmul.mubr.msk.f32.gmra.mrb[18].mxu1 %vm266_vm2, %v792_v14 }
 0x2ca   :  { %v1408_v16 = vpop.eup %1407  ;;  %v754_v17 = vadd.f32 %v1270_v15, %v1678_v38  ;;  %v748_v18 = vpop.f32.mrb[31].mxu0  ;;  %v794_v22 = vld [vmem:[#allocation2 + $0x28] sm:$0xff] }
 0x2cb   :  { %v1410_v19 = vpop.eup %1409  ;;  %782 = vst.msk [vmem:[#allocation2 + $0x48] sm:$0xff] %vm266_vm2, %v1408_v16  ;;  %v749_v20 = vadd.f32 %v1678_v38, %v748_v18  ;;  %v793_v21 = vld [vmem:[#allocation2 + $0x20] sm:$0xff] }
 0x2cc   :  { %781 = vst.msk [vmem:[#allocation2 + $0x40] sm:$0xff] %vm266_vm2, %v1410_v19  ;;  %1419 = vtanh.f32 %v754_v17  ;;  %1285 = vmatprep.mubr.msk.f32.mxu1 %vm266_vm2, %v793_v21 }
 0x2cd   :  { %1421 = vtanh.f32 %v749_v20  ;;  %1286 = vmatmul.mubr.msk.f32.gmra.mrb[20].mxu1 %vm266_vm2, %v794_v22 }
 0x2ce   :  { %v1412_v23 = vpop.eup %1411  ;;  %v796_v26 = vld [vmem:[#allocation2 + $0x38] sm:$0xff] }
 0x2cf   :  { %v1414_v24 = vpop.eup %1413  ;;  %784 = vst.msk [vmem:[#allocation2 + $0x58] sm:$0xff] %vm266_vm2, %v1412_v23  ;;  %v795_v25 = vld [vmem:[#allocation2 + $0x30] sm:$0xff] }
 0x2d0   :  { %783 = vst.msk [vmem:[#allocation2 + $0x50] sm:$0xff] %vm266_vm2, %v1414_v24  ;;  %1288 = vmatprep.mubr.msk.f32.mxu1 %vm266_vm2, %v795_v25 }
 0x2d1   :  { %1289 = vmatmul.mubr.msk.f32.gmra.mrb[22].mxu1 %vm266_vm2, %v796_v26 }
 0x2d2   :  { %v1416_v27 = vpop.eup %1415  ;;  %v798_v30 = vld [vmem:[#allocation2 + $0x48] sm:$0xff] }
 0x2d3   :  { %v1418_v28 = vpop.eup %1417  ;;  %786 = vst.msk [vmem:[#allocation2 + $0x68] sm:$0xff] %vm266_vm2, %v1416_v27  ;;  %v797_v29 = vld [vmem:[#allocation2 + $0x40] sm:$0xff] }
 0x2d4   :  { %785 = vst.msk [vmem:[#allocation2 + $0x60] sm:$0xff] %vm266_vm2, %v1418_v28  ;;  %1291 = vmatprep.mubr.msk.f32.mxu1 %vm266_vm2, %v797_v29 }
 0x2d5   :  { %1292 = vmatmul.mubr.msk.f32.gmra.mrb[24].mxu1 %vm266_vm2, %v798_v30 }
 0x2d6   :  { %v1420_v31 = vpop.eup %1419  ;;  %v800_v34 = vld [vmem:[#allocation2 + $0x58] sm:$0xff] }
 0x2d7   :  { %v1422_v32 = vpop.eup %1421  ;;  %788 = vst.msk [vmem:[#allocation2 + $0x78] sm:$0xff] %vm266_vm2, %v1420_v31  ;;  %v799_v33 = vld [vmem:[#allocation2 + $0x50] sm:$0xff] }
 0x2d8   :  { %787 = vst.msk [vmem:[#allocation2 + $0x70] sm:$0xff] %vm266_vm2, %v1422_v32  ;;  %1294 = vmatprep.mubr.msk.f32.mxu1 %vm266_vm2, %v799_v33 }
 0x2d9   :  { %1295 = vmatmul.mubr.msk.f32.gmra.mrb[26].mxu1 %vm266_vm2, %v800_v34 }
 0x2da   :  { %v802_v36 = vld [vmem:[#allocation2 + $0x68] sm:$0xff] }
 0x2db   :  { %v801_v35 = vld [vmem:[#allocation2 + $0x60] sm:$0xff] }
 0x2dc   :  { %1297 = vmatprep.mubr.msk.f32.mxu1 %vm266_vm2, %v801_v35 }
 0x2dd   :  { %1298 = vmatmul.mubr.msk.f32.gmra.mrb[28].mxu1 %vm266_vm2, %v802_v36 }
 0x2de   :  { %v804_v38 = vld [vmem:[#allocation2 + $0x78] sm:$0xff] }
 0x2df   :  { %v803_v37 = vld [vmem:[#allocation2 + $0x70] sm:$0xff] }
 0x2e0   :  { %1300 = vmatprep.mubr.msk.f32.mxu1 %vm266_vm2, %v803_v37 }
 0x2e1   :  { %1301 = vmatmul.mubr.msk.f32.gmra.mrb[30].mxu1 %vm266_vm2, %v804_v38 }
 0x398   :  { %v1281_v40 = vpop.f32.mrb[16].mxu1 }
 0x399   :  { %v936_v41 = vadd.f32 %v1281_v40, %v1087_v39  ;;  %v930_v42 = vpop.f32.mrb[17].mxu1 }
 0x39a   :  { %v931_v43 = vadd.f32 %v1087_v39, %v930_v42 }
 0x39b   :  { %1011 = vst.msk [vmem:[%s1799_s7 + $0x8] sm:$0xff] %vm1009_vm3, %v936_v41 }
 0x39c   :  { %1010 = vst.msk [vmem:[%s1799_s7] sm:$0xff] %vm1009_vm3, %v931_v43  ;;  %v1284_v44 = vpop.f32.mrb[18].mxu1 }
 0x39d   :  { %v946_v45 = vadd.f32 %v1284_v44, %v1087_v39  ;;  %v940_v46 = vpop.f32.mrb[19].mxu1 }
 0x39e   :  { %v941_v47 = vadd.f32 %v1087_v39, %v940_v46 }
 0x39f   :  { %1013 = vst.msk [vmem:[%s1799_s7 + $0x18] sm:$0xff] %vm1009_vm3, %v946_v45 }
 0x3a0   :  { %1012 = vst.msk [vmem:[%s1799_s7 + $0x10] sm:$0xff] %vm1009_vm3, %v941_v47  ;;  %v1287_v48 = vpop.f32.mrb[20].mxu1 }
 0x3a1   :  { %v956_v49 = vadd.f32 %v1287_v48, %v1087_v39  ;;  %v950_v50 = vpop.f32.mrb[21].mxu1 }
 0x3a2   :  { %v951_v51 = vadd.f32 %v1087_v39, %v950_v50 }
 0x3a3   :  { %1015 = vst.msk [vmem:[%s1799_s7 + $0x28] sm:$0xff] %vm1009_vm3, %v956_v49 }
 0x3a4   :  { %1014 = vst.msk [vmem:[%s1799_s7 + $0x20] sm:$0xff] %vm1009_vm3, %v951_v51  ;;  %v1290_v52 = vpop.f32.mrb[22].mxu1 }
 0x3a5   :  { %v966_v53 = vadd.f32 %v1290_v52, %v1087_v39  ;;  %v960_v54 = vpop.f32.mrb[23].mxu1 }
 0x3a6   :  { %v961_v55 = vadd.f32 %v1087_v39, %v960_v54 }
 0x3a7   :  { %1017 = vst.msk [vmem:[%s1799_s7 + $0x38] sm:$0xff] %vm1009_vm3, %v966_v53 }
 0x3a8   :  { %1016 = vst.msk [vmem:[%s1799_s7 + $0x30] sm:$0xff] %vm1009_vm3, %v961_v55  ;;  %v1293_v56 = vpop.f32.mrb[24].mxu1 }
 0x3a9   :  { %v976_v57 = vadd.f32 %v1293_v56, %v1087_v39  ;;  %v970_v58 = vpop.f32.mrb[25].mxu1 }
 0x3aa   :  { %v971_v59 = vadd.f32 %v1087_v39, %v970_v58 }
 0x3ab   :  { %1019 = vst.msk [vmem:[%s1799_s7 + $0x48] sm:$0xff] %vm1009_vm3, %v976_v57 }
 0x3ac   :  { %1018 = vst.msk [vmem:[%s1799_s7 + $0x40] sm:$0xff] %vm1009_vm3, %v971_v59  ;;  %v1296_v60 = vpop.f32.mrb[26].mxu1 }
 0x3ad   :  { %v986_v61 = vadd.f32 %v1296_v60, %v1087_v39  ;;  %v980_v62 = vpop.f32.mrb[27].mxu1 }
 0x3ae   :  { %v981_v63 = vadd.f32 %v1087_v39, %v980_v62 }
 0x3af   :  { %1021 = vst.msk [vmem:[%s1799_s7 + $0x58] sm:$0xff] %vm1009_vm3, %v986_v61 }
 0x3b0   :  { %1020 = vst.msk [vmem:[%s1799_s7 + $0x50] sm:$0xff] %vm1009_vm3, %v981_v63  ;;  %v1299_v0 = vpop.f32.mrb[28].mxu1 }
 0x3b1   :  { %v996_v1 = vadd.f32 %v1299_v0, %v1087_v39  ;;  %v990_v2 = vpop.f32.mrb[29].mxu1 }
 0x3b2   :  { %v991_v3 = vadd.f32 %v1087_v39, %v990_v2 }
 0x3b3   :  { %1023 = vst.msk [vmem:[%s1799_s7 + $0x68] sm:$0xff] %vm1009_vm3, %v996_v1 }
 0x3b4   :  { %1022 = vst.msk [vmem:[%s1799_s7 + $0x60] sm:$0xff] %vm1009_vm3, %v991_v3  ;;  %v1302_v4 = vpop.f32.mrb[30].mxu1 }
 0x3b5   :  { %v1006_v5 = vadd.f32 %v1302_v4, %v1087_v39  ;;  %v1000_v6 = vpop.f32.mrb[31].mxu1 }
 0x3b6   :  { %v1001_v7 = vadd.f32 %v1087_v39, %v1000_v6 }
 0x3b7   :  { %1025 = vst.msk [vmem:[%s1799_s7 + $0x78] sm:$0xff] %vm1009_vm3, %v1006_v5 }
 0x3b8   :  { %1024 = vst.msk [vmem:[%s1799_s7 + $0x70] sm:$0xff] %vm1009_vm3, %v1001_v7 }

</bundles_post_ra>
